<compile_context>
chip_gen: v7x
topology: tpu7x:2x2x1
jax: 0.10.0
libtpu: 0.0.40
codegen_flags: <defaults>
</compile_context>

<pallas_src>
import functools

import jax
import jax.numpy as jnp
from jax.experimental import pallas as pl
from jax.experimental.pallas import tpu as pltpu

NEG_SLOPE = 0.2
BN_EPS = 1e-5
LN_EPS = 1e-5


# ---------------------------------------------------------------------------
# Kernels
# ---------------------------------------------------------------------------
def _block_kernel_attn(x_ref, w_ref, b_ref, wqkv_ref, bqkv_ref,
                       ln_g_ref, ln_b_ref, o_ref, *, hidden_dims):
    x = x_ref[...]

    # Linear (BatchNorm-eval already folded into w/b) + LeakyReLU
    h = jnp.dot(x, w_ref[...], preferred_element_type=jnp.float32) + b_ref[...]
    z = jnp.where(h >= 0, h, NEG_SLOPE * h)

    # Fused Q|K|V projection: one (TN, D) @ (D, 3D) matmul instead of 3 K=N=32 matmuls.
    qkv = jnp.dot(z, wqkv_ref[...], preferred_element_type=jnp.float32) + bqkv_ref[...]
    d = hidden_dims
    q = qkv[:, 0 * d:1 * d]
    k = qkv[:, 1 * d:2 * d]
    v = qkv[:, 2 * d:3 * d]

    # Attention(Z, Z): elementwise score = K*Q/hidden, softmax over feature dim, out = V*softmax
    score = k * q * (1.0 / d)
    score = score - jnp.max(score, axis=-1, keepdims=True)
    e = jnp.exp(score)
    sm = e * pl.reciprocal(jnp.sum(e, axis=-1, keepdims=True), approx=True)
    z = z + v * sm

    # LayerNorm over the feature dim
    mu = jnp.mean(z, axis=-1, keepdims=True)
    var = jnp.mean((z - mu) * (z - mu), axis=-1, keepdims=True)
    zn = (z - mu) * jax.lax.rsqrt(var + LN_EPS)

    # Dropout: eval-mode identity
    o_ref[...] = (zn * ln_g_ref[...] + ln_b_ref[...]).astype(o_ref.dtype)


def _block_kernel_plain(x_ref, w_ref, b_ref, o_ref):
    x = x_ref[...]
    h = jnp.dot(x, w_ref[...], preferred_element_type=jnp.float32) + b_ref[...]
    o_ref[...] = jnp.where(h >= 0, h, NEG_SLOPE * h).astype(o_ref.dtype)  # Dropout eval = identity


# ---------------------------------------------------------------------------
# Parameters
# ---------------------------------------------------------------------------
def init_params(key, in_dim, out_dim, attn):
    """PyTorch-style params. BN running stats randomized (arbitrary trained state, eval mode)."""
    def lin(k, fin, fout):
        kw, kb = jax.random.split(k)
        bound = 1.0 / (fin ** 0.5)
        w = jax.random.uniform(kw, (fin, fout), jnp.float32, -bound, bound)
        b = jax.random.uniform(kb, (1, fout), jnp.float32, -bound, bound)
        return w, b

    keys = jax.random.split(key, 8)
    p = {}
    p["w"], p["b"] = lin(keys[0], in_dim, out_dim)
    p["bn_g"] = jax.random.uniform(keys[4], (1, out_dim), jnp.float32, 0.5, 1.5)
    p["bn_b"] = 0.1 * jax.random.normal(keys[5], (1, out_dim), jnp.float32)
    p["bn_m"] = 0.1 * jax.random.normal(keys[6], (1, out_dim), jnp.float32)
    p["bn_v"] = jax.random.uniform(keys[7], (1, out_dim), jnp.float32, 0.5, 1.5)
    if attn:
        p["wq"], p["bq"] = lin(keys[1], out_dim, out_dim)
        p["wk"], p["bk"] = lin(keys[2], out_dim, out_dim)
        p["wv"], p["bv"] = lin(keys[3], out_dim, out_dim)
        p["ln_g"] = jnp.ones((1, out_dim), jnp.float32)
        p["ln_b"] = jnp.zeros((1, out_dim), jnp.float32)
    return p


def prepare_params(p, attn):
    """One-time constant folds on weights (not activations): BN(eval) into Linear; concat Q|K|V."""
    scale = p["bn_g"] * jax.lax.rsqrt(p["bn_v"] + BN_EPS)          # (1, D) per-output-column scale
    prep = {
        "w": p["w"] * scale,
        "b": (p["b"] - p["bn_m"]) * scale + p["bn_b"],
    }
    if attn:
        prep["wqkv"] = jnp.concatenate([p["wq"], p["wk"], p["wv"]], axis=1)   # (D, 3D)
        prep["bqkv"] = jnp.concatenate([p["bq"], p["bk"], p["bv"]], axis=1)   # (1, 3D)
        prep["ln_g"] = p["ln_g"]
        prep["ln_b"] = p["ln_b"]
    return prep


# ---------------------------------------------------------------------------
# Wrapper
# ---------------------------------------------------------------------------
def block_forward(x, params, attn, *, tile_rows=2048):
    n, in_dim = x.shape
    out_dim = params["w"].shape[1]

    # Batch tile: multiple of 8 sublanes, capped by tile_rows; pad rows so the grid divides evenly
    # (rows are independent, padded rows are discarded after the call).
    tn = min(tile_rows, ((n + 7) // 8) * 8)
    n_pad = pl.cdiv(n, tn) * tn
    if n_pad != n:
        x = jnp.pad(x, ((0, n_pad - n), (0, 0)))
    grid = (n_pad // tn,)

    row_spec_in = pl.BlockSpec((tn, in_dim), lambda i: (i, 0))
    row_spec_out = pl.BlockSpec((tn, out_dim), lambda i: (i, 0))

    def full_spec(a):  # weights / params: whole array, VMEM-resident across all grid steps
        return pl.BlockSpec(a.shape, lambda i: (0, 0))

    if attn:
        kernel = functools.partial(_block_kernel_attn, hidden_dims=out_dim)
        args = (x, params["w"], params["b"], params["wqkv"], params["bqkv"],
                params["ln_g"], params["ln_b"])
        flops = 2 * n_pad * in_dim * out_dim + 2 * n_pad * out_dim * (3 * out_dim) \
            + 16 * n_pad * out_dim
        transcendentals = n_pad * out_dim + 3 * n_pad      # exp + reciprocal + rsqrt
    else:
        kernel = _block_kernel_plain
        args = (x, params["w"], params["b"])
        flops = 2 * n_pad * in_dim * out_dim + 3 * n_pad * out_dim
        transcendentals = 0
    bytes_accessed = 4 * n_pad * (in_dim + out_dim) + sum(4 * a.size for a in args[1:])

    out = pl.pallas_call(
        kernel,
        out_shape=jax.ShapeDtypeStruct((n_pad, out_dim), jnp.float32),
        grid=grid,
        in_specs=[row_spec_in] + [full_spec(a) for a in args[1:]],
        out_specs=row_spec_out,
        compiler_params=pltpu.CompilerParams(
            dimension_semantics=("parallel",),           # shard batch across TCs on v7x
            vmem_limit_bytes=32 * 1024 * 1024),          # safe on v5e/v6e/v7x
        cost_estimate=pl.CostEstimate(
            flops=int(flops),
            transcendentals=int(transcendentals),
            bytes_accessed=int(bytes_accessed)),
    )(*args)
    return out[:n] if n_pad != n else out


# ---------------------------------------------------------------------------
# Pure-JAX reference (uses the raw, unfused params)
# ---------------------------------------------------------------------------
def block_reference(x, p, attn):
    h = x @ p["w"] + p["b"]
    h = (h - p["bn_m"]) / jnp.sqrt(p["bn_v"] + BN_EPS) * p["bn_g"] + p["bn_b"]
    z = jnp.where(h >= 0, h, NEG_SLOPE * h)
    if not attn:
        return z
    q = z @ p["wq"] + p["bq"]
    k = z @ p["wk"] + p["bk"]
    v = z @ p["wv"] + p["bv"]
    score = k * q / p["w"].shape[1]
    sm = jax.nn.softmax(score, axis=-1)
    z = z + v * sm
    mu = jnp.mean(z, axis=-1, keepdims=True)
    var = jnp.mean((z - mu) ** 2, axis=-1, keepdims=True)
    zn = (z - mu) / jnp.sqrt(var + LN_EPS)
    return zn * p["ln_g"] + p["ln_b"]


if __name__ == "__main__":
    key = jax.random.PRNGKey(0)
    k_x, k_p1, k_p2 = jax.random.split(key, 3)

    # Ragged batch (20) with an 8-row tile -> 3 grid steps + padded last tile are exercised.
    batch, in_dim, out_dim = 20, 32, 32
    x = jax.random.normal(k_x, (batch, in_dim), jnp.float32)

    # attn=True path (Linear+BN+LeakyReLU, Attention residual, LayerNorm)
    raw_attn = init_params(k_p1, in_dim, out_dim, attn=True)
    prep_attn = prepare_params(raw_attn, attn=True)
    y_attn = jax.block_until_ready(block_forward(x, prep_attn, attn=True, tile_rows=8))
    ref_attn = block_reference(x, raw_attn, attn=True)
    assert y_attn.shape == ref_attn.shape
    # tolerance loosened slightly for the approximate EUP reciprocal in the softmax denominator
    assert jnp.allclose(y_attn, ref_attn, atol=5e-3, rtol=5e-3), "attn path mismatch"

    # attn=False path (Linear + BN + LeakyReLU)
    raw_plain = init_params(k_p2, in_dim, out_dim, attn=False)
    prep_plain = prepare_params(raw_plain, attn=False)
    y_plain = jax.block_until_ready(block_forward(x, prep_plain, attn=False, tile_rows=8))
    ref_plain = block_reference(x, raw_plain, attn=False)
    assert jnp.allclose(y_plain, ref_plain, atol=1e-4, rtol=1e-4), "plain path mismatch"

    print("KERNEL_OK")
</pallas_src>

<mosaic_0001>
module attributes {stable_mosaic.version = 11 : i64} {
  func.func @_block_kernel_attn(%arg0: i32, %arg1: memref<8x32xf32, #tpu.memory_space<vmem>>, %arg2: memref<32x32xf32, #tpu.memory_space<vmem>>, %arg3: memref<1x32xf32, #tpu.memory_space<vmem>>, %arg4: memref<32x96xf32, #tpu.memory_space<vmem>>, %arg5: memref<1x96xf32, #tpu.memory_space<vmem>>, %arg6: memref<1x32xf32, #tpu.memory_space<vmem>>, %arg7: memref<1x32xf32, #tpu.memory_space<vmem>>, %arg8: memref<8x32xf32, #tpu.memory_space<vmem>>) attributes {dimension_semantics = [#tpu.dimension_semantics<parallel>], iteration_bounds = array<i64: 3>, scalar_prefetch = 0 : i64, scratch_operands = 0 : i64, tpu.core_type = #tpu.core_type<tc>, window_params = [{transform_indices = @transform_0, window_bounds = array<i64: 8, 32>}, {pipeline_mode = #tpu.pipeline_mode<synchronous>, transform_indices = @transform_1, window_bounds = array<i64: 32, 32>}, {pipeline_mode = #tpu.pipeline_mode<synchronous>, transform_indices = @transform_2, window_bounds = array<i64: 1, 32>}, {pipeline_mode = #tpu.pipeline_mode<synchronous>, transform_indices = @transform_3, window_bounds = array<i64: 32, 96>}, {pipeline_mode = #tpu.pipeline_mode<synchronous>, transform_indices = @transform_4, window_bounds = array<i64: 1, 96>}, {pipeline_mode = #tpu.pipeline_mode<synchronous>, transform_indices = @transform_5, window_bounds = array<i64: 1, 32>}, {pipeline_mode = #tpu.pipeline_mode<synchronous>, transform_indices = @transform_6, window_bounds = array<i64: 1, 32>}, {transform_indices = @transform_7, window_bounds = array<i64: 8, 32>}]} {
    %c0 = arith.constant 0 : index
    %c0_0 = arith.constant 0 : index
    %0 = vector.load %arg1[%c0, %c0_0] : memref<8x32xf32, #tpu.memory_space<vmem>>, vector<8x32xf32>
    %c0_1 = arith.constant 0 : index
    %c0_2 = arith.constant 0 : index
    %1 = vector.load %arg2[%c0_1, %c0_2] : memref<32x32xf32, #tpu.memory_space<vmem>>, vector<32x32xf32>
    %cst = arith.constant dense<0.000000e+00> : vector<8x32xf32>
    %2 = tpu.matmul %0, %1, %cst {dimension_numbers = #tpu.dot_dimension_numbers<[1], [0], [0], [1], [0, 0, 1, 1], [], []>} : vector<8x32xf32>, vector<32x32xf32>, vector<8x32xf32> -> vector<8x32xf32>
    %c0_3 = arith.constant 0 : index
    %c0_4 = arith.constant 0 : index
    %3 = vector.load %arg3[%c0_3, %c0_4] : memref<1x32xf32, #tpu.memory_space<vmem>>, vector<1x32xf32>
    %4 = vector.broadcast %3 : vector<1x32xf32> to vector<8x32xf32>
    %5 = arith.addf %2, %4 : vector<8x32xf32>
    %cst_5 = arith.constant 0.000000e+00 : f32
    %6 = vector.broadcast %cst_5 : f32 to vector<8x32xf32>
    %7 = arith.cmpf oge, %5, %6 : vector<8x32xf32>
    %cst_6 = arith.constant 2.000000e-01 : f32
    %8 = vector.broadcast %cst_6 : f32 to vector<8x32xf32>
    %9 = arith.mulf %8, %5 : vector<8x32xf32>
    %10 = arith.select %7, %5, %9 : vector<8x32xi1>, vector<8x32xf32>
    %c0_7 = arith.constant 0 : index
    %c0_8 = arith.constant 0 : index
    %11 = vector.load %arg4[%c0_7, %c0_8] : memref<32x96xf32, #tpu.memory_space<vmem>>, vector<32x96xf32>
    %cst_9 = arith.constant dense<0.000000e+00> : vector<8x96xf32>
    %12 = tpu.matmul %10, %11, %cst_9 {dimension_numbers = #tpu.dot_dimension_numbers<[1], [0], [0], [1], [0, 0, 1, 1], [], []>} : vector<8x32xf32>, vector<32x96xf32>, vector<8x96xf32> -> vector<8x96xf32>
    %c0_10 = arith.constant 0 : index
    %c0_11 = arith.constant 0 : index
    %13 = vector.load %arg5[%c0_10, %c0_11] : memref<1x96xf32, #tpu.memory_space<vmem>>, vector<1x96xf32>
    %14 = vector.broadcast %13 : vector<1x96xf32> to vector<8x96xf32>
    %15 = arith.addf %12, %14 : vector<8x96xf32>
    %16 = vector.extract_strided_slice %15 {offsets = [0, 0], sizes = [8, 32], strides = [1, 1]} : vector<8x96xf32> to vector<8x32xf32>
    %17 = vector.extract_strided_slice %15 {offsets = [0, 32], sizes = [8, 32], strides = [1, 1]} : vector<8x96xf32> to vector<8x32xf32>
    %18 = vector.extract_strided_slice %15 {offsets = [0, 64], sizes = [8, 32], strides = [1, 1]} : vector<8x96xf32> to vector<8x32xf32>
    %19 = arith.mulf %17, %16 : vector<8x32xf32>
    %cst_12 = arith.constant 3.125000e-02 : f32
    %20 = vector.broadcast %cst_12 : f32 to vector<8x32xf32>
    %21 = arith.mulf %19, %20 : vector<8x32xf32>
    %cst_13 = arith.constant dense<0xFF800000> : vector<8xf32>
    %22 = vector.multi_reduction <maximumf>, %21, %cst_13 [1] : vector<8x32xf32> to vector<8xf32>
    %23 = vector.shape_cast %22 : vector<8xf32> to vector<8x1xf32>
    %24 = vector.broadcast %23 : vector<8x1xf32> to vector<8x32xf32>
    %25 = arith.subf %21, %24 : vector<8x32xf32>
    %26 = math.exp %25 : vector<8x32xf32>
    %cst_14 = arith.constant dense<0.000000e+00> : vector<8xf32>
    %27 = vector.multi_reduction <add>, %26, %cst_14 [1] : vector<8x32xf32> to vector<8xf32>
    %28 = vector.shape_cast %27 : vector<8xf32> to vector<8x1xf32>
    %29 = tpu.reciprocal %28 {approx = true} : vector<8x1xf32> -> vector<8x1xf32>
    %30 = vector.broadcast %29 : vector<8x1xf32> to vector<8x32xf32>
    %31 = arith.mulf %26, %30 : vector<8x32xf32>
    %32 = arith.mulf %18, %31 : vector<8x32xf32>
    %33 = arith.addf %10, %32 : vector<8x32xf32>
    %cst_15 = arith.constant dense<0.000000e+00> : vector<8xf32>
    %34 = vector.multi_reduction <add>, %33, %cst_15 [1] : vector<8x32xf32> to vector<8xf32>
    %35 = vector.shape_cast %34 : vector<8xf32> to vector<8x1xf32>
    %cst_16 = arith.constant 3.200000e+01 : f32
    %36 = vector.broadcast %cst_16 : f32 to vector<8x1xf32>
    %37 = arith.divf %35, %36 : vector<8x1xf32>
    %38 = vector.broadcast %37 : vector<8x1xf32> to vector<8x32xf32>
    %39 = arith.subf %33, %38 : vector<8x32xf32>
    %40 = vector.broadcast %37 : vector<8x1xf32> to vector<8x32xf32>
    %41 = arith.subf %33, %40 : vector<8x32xf32>
    %42 = arith.mulf %39, %41 : vector<8x32xf32>
    %cst_17 = arith.constant dense<0.000000e+00> : vector<8xf32>
    %43 = vector.multi_reduction <add>, %42, %cst_17 [1] : vector<8x32xf32> to vector<8xf32>
    %44 = vector.shape_cast %43 : vector<8xf32> to vector<8x1xf32>
    %cst_18 = arith.constant 3.200000e+01 : f32
    %45 = vector.broadcast %cst_18 : f32 to vector<8x1xf32>
    %46 = arith.divf %44, %45 : vector<8x1xf32>
    %47 = vector.broadcast %37 : vector<8x1xf32> to vector<8x32xf32>
    %48 = arith.subf %33, %47 : vector<8x32xf32>
    %cst_19 = arith.constant 9.99999974E-6 : f32
    %49 = vector.broadcast %cst_19 : f32 to vector<8x1xf32>
    %50 = arith.addf %46, %49 : vector<8x1xf32>
    %51 = math.rsqrt %50 : vector<8x1xf32>
    %52 = vector.broadcast %51 : vector<8x1xf32> to vector<8x32xf32>
    %53 = arith.mulf %48, %52 : vector<8x32xf32>
    %c0_20 = arith.constant 0 : index
    %c0_21 = arith.constant 0 : index
    %54 = vector.load %arg6[%c0_20, %c0_21] : memref<1x32xf32, #tpu.memory_space<vmem>>, vector<1x32xf32>
    %55 = vector.broadcast %54 : vector<1x32xf32> to vector<8x32xf32>
    %56 = arith.mulf %53, %55 : vector<8x32xf32>
    %c0_22 = arith.constant 0 : index
    %c0_23 = arith.constant 0 : index
    %57 = vector.load %arg7[%c0_22, %c0_23] : memref<1x32xf32, #tpu.memory_space<vmem>>, vector<1x32xf32>
    %58 = vector.broadcast %57 : vector<1x32xf32> to vector<8x32xf32>
    %59 = arith.addf %56, %58 : vector<8x32xf32>
    %c0_24 = arith.constant 0 : index
    %c0_25 = arith.constant 0 : index
    %60 = vector.load %arg8[%c0_24, %c0_25] : memref<8x32xf32, #tpu.memory_space<vmem>>, vector<8x32xf32>
    tpu.vector_store %arg8[%c0_24, %c0_25], %59 {strides = array<i32>} : memref<8x32xf32, #tpu.memory_space<vmem>>, vector<8x32xf32>,
    return
  }
  func.func @transform_0(%arg0: i32) -> (i32, i32) {
    %c0_i32 = arith.constant 0 : i32
    %c0_i32_0 = arith.constant 0 : i32
    return %arg0, %c0_i32 : i32, i32
  }
  func.func @transform_1(%arg0: i32) -> (i32, i32) {
    %c0_i32 = arith.constant 0 : i32
    %c0_i32_0 = arith.constant 0 : i32
    %c0_i32_1 = arith.constant 0 : i32
    return %c0_i32, %c0_i32_0 : i32, i32
  }
  func.func @transform_2(%arg0: i32) -> (i32, i32) {
    %c0_i32 = arith.constant 0 : i32
    %c0_i32_0 = arith.constant 0 : i32
    %c0_i32_1 = arith.constant 0 : i32
    return %c0_i32, %c0_i32_0 : i32, i32
  }
  func.func @transform_3(%arg0: i32) -> (i32, i32) {
    %c0_i32 = arith.constant 0 : i32
    %c0_i32_0 = arith.constant 0 : i32
    %c0_i32_1 = arith.constant 0 : i32
    return %c0_i32, %c0_i32_0 : i32, i32
  }
  func.func @transform_4(%arg0: i32) -> (i32, i32) {
    %c0_i32 = arith.constant 0 : i32
    %c0_i32_0 = arith.constant 0 : i32
    %c0_i32_1 = arith.constant 0 : i32
    return %c0_i32, %c0_i32_0 : i32, i32
  }
  func.func @transform_5(%arg0: i32) -> (i32, i32) {
    %c0_i32 = arith.constant 0 : i32
    %c0_i32_0 = arith.constant 0 : i32
    %c0_i32_1 = arith.constant 0 : i32
    return %c0_i32, %c0_i32_0 : i32, i32
  }
  func.func @transform_6(%arg0: i32) -> (i32, i32) {
    %c0_i32 = arith.constant 0 : i32
    %c0_i32_0 = arith.constant 0 : i32
    %c0_i32_1 = arith.constant 0 : i32
    return %c0_i32, %c0_i32_0 : i32, i32
  }
  func.func @transform_7(%arg0: i32) -> (i32, i32) {
    %c0_i32 = arith.constant 0 : i32
    %c0_i32_0 = arith.constant 0 : i32
    return %arg0, %c0_i32 : i32, i32
  }
}

</mosaic_0001>

<bundles_post_ra>
// kernel: tpu_custom_call.1
= control target key start
LH: loop header
LB: loop body
LE: loop exit
PB: predicated region body
PF: predicated region fallthrough
CT: control target
= control target key end

     0   :  { %12 = vsyncpa [#allocation3], 0  ;;  %s1261_s0 = inlined_call_operand.hbm [shape: f32[24,32], index: 0, kind: input, shape index: {}]   ;;  %s1262_s1 = inlined_call_operand.hbm [shape: f32[32,32], index: 1, kind: input, shape index: {}]   ;;  %s1263_s2 = inlined_call_operand.vmem [shape: f32[1,32], index: 2, kind: input, shape index: {}]   ;;  %s1264_s3 = inlined_call_operand.hbm [shape: f32[32,96], index: 3, kind: input, shape index: {}]   ;;  %s1265_s4 = inlined_call_operand.vmem [shape: f32[1,96], index: 4, kind: input, shape index: {}]   ;;  %s1266_s5 = inlined_call_operand.vmem [shape: f32[1,32], index: 5, kind: input, shape index: {}]   ;;  %s1267_s6 = inlined_call_operand.vmem [shape: f32[1,32], index: 6, kind: input, shape index: {}]   ;;  %s1268_s7 = inlined_call_operand.hbm [shape: f32[24,32], index: 7, kind: output, shape index: {}]  }
   0x1   :  { %14 = vsyncpa [#allocation3 + $0x1], 0 }
   0x2   :  { %15 = vsyncpa [#allocation6], 0 }
   0x3   :  { %16 = vsyncpa [#allocation4], 0 }
   0x4   :  { %18 = vsyncpa [#allocation4 + $0x1], 0  ;;  %s1019_s24 = smov 0   ;;  %s1021_s25 = smov 0  }
   0x5   :  { %s1023_s26 = smov 0   ;;  %s1025_s27 = smov 0  }
   0x6 LB: > { %s1040_s28 = sadd.s32 4294967295, %s965_s27   ;;  %s662_s29 = sadd.s32 4294967294, %s965_s27   ;;  %s965_s27 = sphi %s1025_s27, %s1287_s27   ;;  %s961_s26 = sphi %s1023_s26, %s1286_s26   ;;  %s957_s25 = sphi %s1021_s25, %s1285_s25   ;;  %s953_s24 = sphi %s1019_s24, %s1284_s24  }
   0x7   : > { %p44_p0 = scmp.ne.s32.totalorder %s957_s25, %s953_s24  ;;  %p1269_p1 = scmp.eq.s32.totalorder %s1040_s28, 0 }
   0x8   : > { %p200_p3 = scmp.eq.s32.totalorder %s662_s29, 2  ;;  %p663_p5 = scmp.ge.s32.totalorder %s965_s27, 1 }
   0x9   : > { %p1049_p4 = por %p1269_p1, %p44_p0  ;;  %p207_p7 = scmp.lt.s32.totalorder %s965_s27, 4 }
   0xa   : > { %p1054_p6 = por %p200_p3, %p44_p0  ;;  %s967_s10 = smov [#allocation5]  }
   0xb   : > { %s1272_s30 = scalar_select %p1049_p4, 1, 0 }
   0xc   : > { %s1273_s8 = scalar_select %p1054_p6, 1, 0 }
   0xd   : > { %p1059_p8 = pnand %p663_p5, %p207_p7  ;;  %s219_s11 = sshll.u32 %s967_s10, 4  ;;  %s220_s11 = int_to_ptr.vmem [resolvable:$true] %s219_s11 }
   0xe   : > { %s968_s13 = smov [#allocation7]   ;;  %s809_s17 = scalar_lea.hbm %s1262_s1, 512 }
   0xf   : > { %s1274_s9 = scalar_select %p1059_p8, 1, 0 }
  0x10   : > { %p740_p9 = pneg %p1059_p8  ;;  %s235_s14 = sshll.u32 %s968_s13, 4  ;;  %s1071_s14 = int_to_ptr.vmem [resolvable:$true] %s235_s14 }
  0x11   : > { %p810_p11 = scmp.ne.s32.totalorder %s1262_s1, %s809_s17  ;;  %p816_p3 = scmp.lt.u32.totalorder %s809_s17, %s1262_s1 }
  0x12   : > { %p1067_p10 = pnand %p740_p9, %p1269_p1 }
  0x14   : > { %p811_p12 = pneg %p1067_p10 }
  0x16   : > { %p812_p13 = pnand %p811_p12, %p810_p11 }
  0x18   : > { %p813_p0 = pneg %p812_p13 }
  0x1a   : > { %p818_p5 = pnand %p816_p3, %p813_p0 }
  0x1c   : > { %821 = shalt.err (!%p818_p5)
}
  0x1d   : > { %s822_s22 = scalar_lea.vmem %s220_s11, 512  ;;  %p830_p2 = scmp.lt.s32.totalorder %s220_s11, %s220_s11 }
  0x1e   : > { %p823_p7 = scmp.ne.s32.totalorder %s220_s11, %s822_s22  ;;  %p831_p6 = scmp.lt.s32.totalorder %s822_s22, %s822_s22 }
  0x20   : > { %p825_p9 = pnand %p823_p7, %p811_p12  ;;  %p832_p4 = por %p831_p6, %p830_p2 }
  0x22   : > { %p826_p1 = pneg %p825_p9 }
  0x24   : > { %p833_p8 = pnand %p832_p4, %p826_p1 }
  0x26   : > { %836 = shalt.err (!%p833_p8)
}
  0x27   : > { %s969_s23 = smov 128   ;;  %s970_s29 = smov 8  }
  0x28   : > { %743 = dma.hbm_to_vmem [thread:$0]  (!%p1067_p10), %s1262_s1, 512, %s220_s11, [#allocation6], %s969_s23, %s969_s23, %s970_s29  }
  0x29   : > { %s837_s17 = scalar_lea.hbm %s1264_s3, 512 }
  0x2a   : > { %p838_p11 = scmp.ne.s32.totalorder %s1264_s3, %s837_s17  ;;  %p844_p4 = scmp.lt.u32.totalorder %s837_s17, %s1264_s3 }
  0x2c   : > { %p840_p1 = pnand %p838_p11, %p811_p12 }
  0x2e   : > { %p841_p2 = pneg %p840_p1 }
  0x30   : > { %p846_p6 = pnand %p844_p4, %p841_p2 }
  0x32   : > { %849 = shalt.err (!%p846_p6)
}
  0x33   : > { %s850_s11 = scalar_lea.vmem %s1071_s14, 512  ;;  %p858_p3 = scmp.lt.s32.totalorder %s1071_s14, %s1071_s14 }
  0x34   : > { %p851_p8 = scmp.ne.s32.totalorder %s1071_s14, %s850_s11  ;;  %p859_p5 = scmp.lt.s32.totalorder %s850_s11, %s850_s11 }
  0x36   : > { %p853_p13 = pnand %p851_p8, %p811_p12  ;;  %p860_p7 = por %p859_p5, %p858_p3 }
  0x38   : > { %p854_p0 = pneg %p853_p13 }
  0x3a   : > { %p861_p9 = pnand %p860_p7, %p854_p0 }
  0x3c   : > { %864 = shalt.err (!%p861_p9)
}
  0x3d   : > { %746 = dma.hbm_to_vmem [thread:$0]  (!%p1067_p10), %s1264_s3, 512, %s1071_s14, [#allocation6], %s969_s23, %s969_s23, %s970_s29  }
  0x3e   : > { %s1121_s13 = sadd.s32 1, %s965_s27   ;;  %s31_s12 = sadd.s32 1, %s961_s26 }
  0x3f   : > { %s28_s15 = ssub.s32 %s965_s27, %s1121_s13  ;;  %p38_p12 = scmp.ne.s32.totalorder %s961_s26, %s957_s25 }
  0x40   : > { %p29_p11 = scmp.eq.s32.totalorder %s28_s15, 0  ;;  %p39_p1 = scmp.eq.s32.totalorder %s965_s27, 0 }
  0x41   : > { %p1276_p2 = scmp.eq.s32.totalorder %s1040_s28, 2  ;;  %p757_p6 = scmp.lt.s32.totalorder %s965_s27, 3 }
  0x42   : > { %s1137_s17 = scalar_select %p29_p11, %s961_s26, %s31_s12  }
  0x43   : > { %p1131_p4 = por %p1276_p2, %p38_p12  ;;  %p40_p8 = por %p39_p1, %p38_p12 }
  0x44   : > { %s258_s18 = sand.u32 1, %s961_s26   ;;  %s668_s14 = sshll.u32 %s965_s27, 7 }
  0x45   : > { %s667_s19 = sshll.u32 %s258_s18, 3  ;;  %s1144_s20 = scalar_lea.hbm %s1261_s0, %s668_s14 }
  0x46   : > { %s262_s21 = scalar_lea.vmem [#allocation2], %s667_s19  ;;  %p1148_p10 = pnand %p757_p6, %p40_p8 }
  0x47   : > { %s269_s11 = sshll.u32 %s262_s21, 4  ;;  %s259_s10 = scalar_lea.sflag [#allocation3], %s258_s18  ;;  %s1146_s11 = int_to_ptr.vmem [resolvable:$true] %s269_s11 }
  0x48   : > { %s865_s12 = scalar_lea.hbm %s1144_s20, 128  ;;  %p867_p0 = pneg %p1148_p10 }
  0x49   : > { %p866_p13 = scmp.ne.s32.totalorder %s1144_s20, %s865_s12  ;;  %s870_s14 = scalar_lea.hbm %s1261_s0, 384 }
  0x4a   : > { %p871_p7 = scmp.lt.u32.totalorder %s1144_s20, %s1261_s0  ;;  %p872_p9 = scmp.lt.u32.totalorder %s870_s14, %s865_s12 }
  0x4b   : > { %p868_p3 = pnand %p867_p0, %p866_p13  ;;  %p874_p11 = scmp.lt.u32.totalorder %s865_s12, %s1144_s20 }
  0x4c   : > { %p873_p12 = por %p872_p9, %p871_p7 }
  0x4d   : > { %p869_p5 = pneg %p868_p3 }
  0x4e   : > { %p875_p1 = por %p874_p11, %p873_p12 }
  0x50   : > { %p876_p2 = pnand %p875_p1, %p869_p5 }
  0x52   : > { %879 = shalt.err (!%p876_p2)
}
  0x53   : > { %s880_s18 = scalar_lea.vmem %s1146_s11, 128  ;;  %s971_s21 = smov [#allocation2]  }
  0x54   : > { %p881_p6 = scmp.ne.s32.totalorder %s1146_s11, %s880_s18  ;;  %s885_s15 = sshll.u32 %s971_s21, 4  ;;  %s886_s15 = int_to_ptr.vmem [resolvable:$false] %s885_s15 }
  0x55   : > { %s887_s19 = scalar_lea.vmem %s886_s15, 256  ;;  %p888_p3 = scmp.lt.s32.totalorder %s1146_s11, %s886_s15 }
  0x56   : > { %p883_p8 = pnand %p881_p6, %p867_p0  ;;  %p889_p7 = scmp.lt.s32.totalorder %s887_s19, %s880_s18 }
  0x58   : > { %p884_p13 = pneg %p883_p8  ;;  %p890_p9 = por %p889_p7, %p888_p3 }
  0x5a   : > { %p891_p12 = pnand %p890_p9, %p884_p13 }
  0x5c   : > { %894 = shalt.err (!%p891_p12)
}
  0x5d   : > { %750 = dma.hbm_to_vmem [thread:$0]  (!%p1148_p10), %s1144_s20, 128, %s1146_s11, %s259_s10  }
  0x5e   : > { %p1279_p5 = scmp.ne.s32.totalorder %s1274_s9, 0 }
  0x5f   : > { %s1180_s12 = sand.u32 (!%p1279_p5), 1, %s957_s25   ;;  %p1280_p0 = scmp.ne.s32.totalorder (!%p1279_p5), %s1272_s30, 0 }
  0x60   : > { %278 = sbr.rel (%p1279_p5) target bundleno = 1657 (0x679), region = 48  ;;  %s670_s14 = sshll.u32 (!%p1279_p5), %s1180_s12, 3 }
  0x61   : > { %s281_s23 = scalar_lea.sflag (!%p1279_p5), [#allocation3], %s1180_s12  ;;  %s284_s29 = scalar_lea.vmem (!%p1279_p5), [#allocation2], %s670_s14 }
  0x67   : > { %940 = dma.done.wait (%p1280_p0), %s281_s23, 128  }
  0x68   : > { %942 = vsyncadd (%p1280_p0), %s281_s23, 4294967168  ;;  %p1281_p10 = scmp.eq.s32.totalorder %s1040_s28, 0 }
  0x6a   : > { %944 = dma.done.wait (%p1281_p10), [#allocation6], 1024   ;;  %p1282_p11 = pmov %p1281_p10 }
  0x6b   : > { %v972_v0 = vmov 0.0|0.0   ;;  %vm973_vm0 = vmmov 0   ;;  %v974_v1 = vmov 0.0   ;;  %v324_v2 = vld [vmem:[#allocation5] sm:$0xff]  ;;  %v325_v3 = vld [vmem:[#allocation5 + $0x8] sm:$0xff]  ;;  %v326_v4 = vld [vmem:[#allocation5 + $0x10] sm:$0xff] }
  0x6c   : > { %946 = vsyncadd (%p1282_p11), [#allocation6], 4294966272  ;;  %716 = vmatprep.subr.bf16.mxu0 %v972_v0  ;;  %702 = vmatprep.mubr.msk.f32.mxu0 %vm973_vm0, %v974_v1  ;;  %v717_v5 = vpack.c.bf16 %v325_v3, %v324_v2  ;;  %v327_v6 = vld [vmem:[#allocation5 + $0x18] sm:$0xff]  ;;  %v412_v7 = vld [vmem:[#allocation7] sm:$0xff]  ;;  %vm335_vm1 = vcmask 261120   ;;  %s975_s22 = smov 32  }
  0x6d   : > { %722 = vmatprep.subr.bf16.mxu1 %v972_v0  ;;  %713 = vmatprep.mubr.msk.f32.mxu1 %vm973_vm0, %v974_v1  ;;  %v413_v8 = vld [vmem:[#allocation7 + $0x8] sm:$0xff]  ;;  %v720_v9 = vpack.c.bf16 %v327_v6, %v326_v4  ;;  %v323_v11 = vld [vmem:[%s284_s29] sm:$0xff]  ;;  %vm502_vm3 = vcmask 523520   ;;  %s976_s10 = smov 96   ;;  %s977_s18 = smov 64  }
  0x6e   : > { %718 = vmatpush3.bf16.msra.mxu0 %v717_v5  ;;  %v723_v10 = vpack.c.bf16 %v413_v8, %v412_v7  ;;  %v414_v12 = vld [vmem:[#allocation7 + $0x10] sm:$0xff]  ;;  %v415_v13 = vld [vmem:[#allocation7 + $0x18] sm:$0xff]  ;;  %s681_s29 = sshll.u32 %s1040_s28, 7  ;;  %s322_s30 = scalar_lea.vmem [#allocation8], %s670_s14 }
  0x6f   : > { %719 = vmatprep.subr.bf16.mxu0 %v972_v0  ;;  %v726_v14 = vpack.c.bf16 %v415_v13, %v414_v12  ;;  %v674_v15 = vld [vmem:[%s1263_s2] ss:$0 sm:$0xff]  ;;  %s573_s9 = sshll.u32 %s322_s30, 4  ;;  %s978_s28 = smov [#allocation8]   ;;  %s1219_s9 = int_to_ptr.vmem [resolvable:$true] %s573_s9 }
  0x70   : > { %724 = vmatpush3.bf16.msra.mxu1 %v723_v10  ;;  %v676_v21 = vld [vmem:[%s1265_s4] ss:$0 sm:$0xff]  ;;  %s899_s14 = sshll.u32 %s978_s28, 4  ;;  %s900_s14 = int_to_ptr.vmem [resolvable:$false] %s899_s14 }
  0x71   : > { %725 = vmatprep.subr.bf16.mxu1 %v972_v0  ;;  %v678_v52 = vld [vmem:[%s1266_s5] ss:$0 sm:$0xff]  ;;  %s901_s21 = scalar_lea.vmem %s900_s14, 256  ;;  %p902_p8 = scmp.lt.s32.totalorder %s1219_s9, %s900_s14 }
  0x72   : > { %721 = vmatpush3.bf16.msra.mxu0 %v720_v9  ;;  %v679_v54 = vld [vmem:[%s1267_s6] ss:$0 sm:$0xff] }
  0x74   : > { %727 = vmatpush3.bf16.msra.mxu1 %v726_v14 }
  0x75   : > { %703 = vmatmul.mubr.msk.f32.vlgmr.msra.gmra.mrb[0].mxu0 %vm335_vm1, %v323_v11 }
 0x148   : > { %v405_v16 = vpop.f32.mrb[0].mxu0 }
 0x149   : > { %v406_v17 = vadd.f32 %v674_v15, %v405_v16  ;;  %v704_v18 = vpop.f32.mrb[1].mxu0 }
 0x14b   : > { %vm409_vm2 = vcmp.ge.f32.partialorder %v406_v17, 0.0  ;;  %v410_v19 = vmul.f32 0.2, %v406_v17 }
 0x14d   : > { %v411_v20 = vsel %vm409_vm2, %v406_v17, %v410_v19 }
 0x14e   : > { %714 = vmatmul.mubr.msk.f32.vlgmr.msra.gmra.mrb[0].mxu1 %vm335_vm1, %v411_v20 }
 0x221   : > { %v492_v22 = vpop.f32.mrb[0].mxu1 }
 0x222   : > { %v493_v23 = vadd.f32 %v676_v21, %v492_v22  ;;  %v715_v24 = vpop.f32.mrb[1].mxu1 }
 0x224   : > { %497 = vrot.lane.b32.xlu0 %v493_v23, %s975_s22 }
 0x296   : > { %v498_v25 = vpop.permute.xlu0 %497 }
 0x297   : > { %v500_v26 = vmul.f32 %v498_v25, %v493_v23 }
 0x299   : > { %v501_v27 = vmul.f32 0.03125, %v500_v26 }
 0x29b   : > { %v503_v28 = vsel %vm502_vm3, %v501_v27, -inf }
 0x29c   : > { %504 = vmax.xlane.f32.xlu0 %v503_v28 }
 0x329   : > { %v505_v29 = vpop.xlane.xlu0 %504 }
 0x32a   : > { %v506_v30 = vsub.f32 %v501_v27, %v505_v29 }
 0x32c   : > { %v507_v31 = vmul.f32 1.442695, %v506_v30 }
 0x32e   : > { %803 = vpow2.f32 %v507_v31 }
 0x338   : > { %v804_v32 = vpop.eup %803 }
 0x339   : > { %510 = vrot.lane.b32.xlu1 %v804_v32, %s976_s10  ;;  %s560_s10 = scalar_lea.sflag [#allocation4], %s1180_s12 }
 0x3ab   : > { %v511_v33 = vpop.permute.xlu1 %510 }
 0x3ac   : > { %v513_v34 = vsel %vm335_vm1, %v511_v33, 0.0 }
 0x3ad   : > { %514 = vadd.xlane.f32.xlu1 %v513_v34 }
 0x43a   : > { %v515_v35 = vpop.xlane.xlu1 %514 }
 0x43b   : > { %805 = vrcp.f32 %v515_v35 }
 0x445   : > { %v806_v36 = vpop.eup %805 }
 0x446   : > { %v517_v37 = vmul.f32 %v806_v36, %v804_v32 }
 0x448   : > { %519 = vrot.lane.b32.xlu0 %v517_v37, %s975_s22  ;;  %s1217_s22 = scalar_lea.hbm %s1268_s7, %s681_s29 }
 0x4ba   : > { %v520_v38 = vpop.permute.xlu0 %519 }
 0x4bb   : > { %v522_v39 = vmul.f32 %v520_v38, %v493_v23 }
 0x4bd   : > { %524 = vrot.lane.b32.xlu1 %v522_v39, %s977_s18  ;;  %s895_s18 = scalar_lea.vmem %s1219_s9, 128 }
 0x4be   : > { %p896_p1 = scmp.ne.s32.totalorder %s1219_s9, %s895_s18  ;;  %p903_p13 = scmp.lt.s32.totalorder %s901_s21, %s895_s18 }
 0x4c0   : > { %p897_p2 = pnand %p896_p1, %p1131_p4  ;;  %p904_p3 = por %p903_p13, %p902_p8 }
 0x4c2   : > { %p898_p6 = pneg %p897_p2 }
 0x4c4   : > { %p905_p7 = pnand %p904_p3, %p898_p6 }
 0x52f   : > { %v525_v40 = vpop.permute.xlu1 %524 }
 0x530   : > { %v527_v41 = vadd.f32 %v525_v40, %v411_v20 }
 0x532   : > { %v528_v42 = vsel %vm335_vm1, %v527_v41, 0.0 }
 0x533   : > { %529 = vadd.xlane.f32.xlu0 %v528_v42 }
 0x5c0   : > { %v530_v43 = vpop.xlane.xlu0 %529 }
 0x5c1   : > { %v532_v44 = vmul.f32 0.03125, %v530_v43 }
 0x5c3   : > { %v533_v45 = vsub.f32 %v527_v41, %v532_v44 }
 0x5c5   : > { %v534_v46 = vmul.f32 %v533_v45, %v533_v45 }
 0x5c7   : > { %v535_v47 = vsel %vm335_vm1, %v534_v46, 0.0 }
 0x5c8   : > { %536 = vadd.xlane.f32.xlu1 %v535_v47 }
 0x655   : > { %v537_v48 = vpop.xlane.xlu1 %536 }
 0x656   : > { %v538_v49 = vmul.f32 0.03125, %v537_v48 }
 0x658   : > { %v539_v50 = vadd.f32 1e-05, %v538_v49 }
 0x65a   : > { %807 = vrsqrt.f32 %v539_v50 }
 0x664   : > { %v808_v51 = vpop.eup %807 }
 0x665   : > { %v541_v53 = vmul.f32 %v808_v51, %v533_v45 }
 0x667   : > { %v549_v55 = vmul.f32 %v678_v52, %v541_v53 }
 0x669   : > { %v557_v56 = vadd.f32 %v679_v54, %v549_v55 }
 0x66b   : > { %558 = vst.msk [vmem:[%s322_s30] sm:$0xff] %vm335_vm1, %v557_v56 }
 0x66c   : > { %908 = shalt.err (!%p905_p7)
}
 0x66d   : > { %s909_s12 = scalar_lea.hbm %s1217_s22, 128  ;;  %s913_s23 = scalar_lea.hbm %s1268_s7, 384 }
 0x66e   : > { %p910_p9 = scmp.ne.s32.totalorder %s1217_s22, %s909_s12  ;;  %p914_p0 = scmp.lt.u32.totalorder %s1217_s22, %s1268_s7 }
 0x66f   : > { %p915_p10 = scmp.lt.u32.totalorder %s913_s23, %s909_s12  ;;  %p917_p1 = scmp.lt.u32.totalorder %s909_s12, %s1217_s22 }
 0x670   : > { %p911_p12 = pnand %p910_p9, %p1131_p4 }
 0x671   : > { %p916_p11 = por %p915_p10, %p914_p0 }
 0x672   : > { %p912_p5 = pneg %p911_p12 }
 0x673   : > { %p918_p2 = por %p917_p1, %p916_p11 }
 0x675   : > { %p919_p6 = pnand %p918_p2, %p912_p5 }
 0x677   : > { %922 = shalt.err (!%p919_p6)
}
 0x678   : > { %738 = dma.vmem_to_hbm [thread:$0]  (%p1131_p4), %s1219_s9, 128, %s1217_s22, %s560_s10  }
 0x679 PF: > { %p760_p8 = scmp.ge.s32.totalorder %s965_s27, 2  ;;  %s585_s20 = sand.u32 1, %s953_s24  }
 0x67a   : > { %p1283_p13 = scmp.ne.s32.totalorder %s1273_s8, 0  ;;  %s586_s11 = scalar_lea.sflag [#allocation4], %s585_s20 }
 0x67c   : > { %p752_p3 = pnand %p760_p8, %p1283_p13 }
 0x67e   : > { %948 = dma.done.wait (!%p752_p3), %s586_s11, 128  }
 0x67f   : > { %950 = vsyncadd (!%p752_p3), %s586_s11, 4294967168  ;;  %p21_p7 = scmp.ge.s32.totalorder %s1121_s13, 5   ;;  %s1284_s24 = smov %s957_s25 }
 0x680   : > { %s1285_s25 = smov %s961_s26  ;;  %s1286_s26 = smov %s1137_s17 }
 0x681   : > { %s1287_s27 = smov %s1121_s13  ;;  %23 = sbr.rel (!%p21_p7) target bundleno = 6 (0x6), region = 101 }
 0x688   :  { %591 = vsyncpa [#allocation3], 1 }
 0x689   :  { %593 = vsyncpa [#allocation3 + $0x1], 1 }
 0x68a   :  { %594 = vsyncpa [#allocation6], 1 }
 0x68b   :  { %595 = vsyncpa [#allocation4], 1 }
 0x68c   :  { %597 = vsyncpa [#allocation4 + $0x1], 1 }

</bundles_post_ra>
